<compile_context>
chip_gen: v7x
topology: tpu7x:2x2x1
jax: 0.10.0
libtpu: 0.0.40
codegen_flags: <defaults>
</compile_context>

<pallas_src>
import jax
import jax.numpy as jnp
from jax.experimental import pallas as pl
from jax.experimental.pallas import tpu as pltpu


def _rnn_seq_kernel(h0_ref, x_ref, w_ref, b_ref, out_ref, h_scr):
    """One RNN timestep per grid iteration; h carried in VMEM scratch.

    h0_ref : (Bp, H)       initial hidden state (resident, read at t==0)
    x_ref  : (Bp, I)       input for this timestep (squeezed T dim)
    w_ref  : (I+H, H+O)    fused [W_i2h.T | W_i2o.T] (resident)
    b_ref  : (1, H+O)      fused [b_i2h | b_i2o]     (resident)
    out_ref: (Bp, H+O)     per-step output slab: [:, :H]=h_new, [:, H:]=log_softmax(y)
    h_scr  : (Bp, H)       hidden-state carry (VMEM scratch, persists over grid)
    """
    I = x_ref.shape[-1]
    H = h_scr.shape[-1]

    @pl.when(pl.program_id(0) == 0)
    def _():
        h_scr[...] = h0_ref[...]

    x = x_ref[...]                                     # (Bp, I)
    h = h_scr[...]                                     # (Bp, H)

    # Split matmul (no lane concat): [x | h] @ W  ==  x @ W[:I] + h @ W[I:].
    z = (jnp.dot(x, w_ref[:I, :], preferred_element_type=jnp.float32)
         + jnp.dot(h, w_ref[I:, :], preferred_element_type=jnp.float32)
         + b_ref[...])                                 # (Bp, H+O)

    h_new = z[:, :H]                                   # hidden branch
    logits = z[:, H:]                                  # output branch

    # Numerically-stable log-softmax along the feature axis.
    m = jnp.max(logits, axis=1, keepdims=True)
    shifted = logits - m
    lse = jnp.log(jnp.sum(jnp.exp(shifted), axis=1, keepdims=True))
    y = shifted - lse

    h_scr[...] = h_new                                 # carry to next timestep
    out_ref[:, :H] = h_new.astype(out_ref.dtype)
    out_ref[:, H:] = y.astype(out_ref.dtype)


def prepare_params(w_i2h, b_i2h, w_i2o, b_i2o):
    """One-time parameter prep (hoisted out of the per-step path).

    w_i2h: (H, I+H), b_i2h: (H,)  — PyTorch nn.Linear (out, in) layout
    w_i2o: (O, I+H), b_i2o: (O,)
    Returns (w_fused, b_fused): (I+H, H+O) and (1, H+O).
    """
    w_fused = jnp.concatenate(
        [jnp.transpose(w_i2h), jnp.transpose(w_i2o)], axis=1)
    b_fused = jnp.concatenate([b_i2h, b_i2o])[None, :]
    return w_fused, b_fused


def basic_rnn_sequence(x_seq, h0, w_fused, b_fused):
    """Run T fused RNN steps in one pallas_call.

    x_seq:   (T, B, I) float32
    h0:      (B, H)    float32
    w_fused: (I+H, H+O)
    b_fused: (1, H+O)
    returns (y_seq, h_seq): (T, B, O), (T, B, H)
    """
    T, B, I = x_seq.shape
    H = h0.shape[-1]
    HO = w_fused.shape[-1]

    # Pad batch to a multiple of 8 sublanes (f32) for dense vreg layout.
    Bp = ((B + 7) // 8) * 8
    if Bp != B:
        x_seq = jnp.pad(x_seq, ((0, 0), (0, Bp - B), (0, 0)))
        h0 = jnp.pad(h0, ((0, Bp - B), (0, 0)))

    out = pl.pallas_call(
        _rnn_seq_kernel,
        out_shape=jax.ShapeDtypeStruct((T, Bp, HO), x_seq.dtype),
        grid=(T,),
        in_specs=[
            pl.BlockSpec((Bp, H), lambda t: (0, 0)),          # h0 (resident)
            pl.BlockSpec((None, Bp, I), lambda t: (t, 0, 0)),  # x_t
            pl.BlockSpec((I + H, HO), lambda t: (0, 0)),       # weights (resident)
            pl.BlockSpec((1, HO), lambda t: (0, 0)),           # bias (resident)
        ],
        out_specs=pl.BlockSpec((None, Bp, HO), lambda t: (t, 0, 0)),
        scratch_shapes=[pltpu.VMEM((Bp, H), jnp.float32)],     # hidden carry
        compiler_params=pltpu.CompilerParams(
            dimension_semantics=("arbitrary",)),               # sequential carry
    )(h0, x_seq, w_fused, b_fused)

    h_seq = out[:, :B, :H]
    y_seq = out[:, :B, H:]
    return y_seq, h_seq


def basic_rnn_forward(x, h, w_fused, b_fused):
    """Single-step cell (exact BasicRNN.forward semantics): (y, h_new)."""
    y_seq, h_seq = basic_rnn_sequence(x[None], h, w_fused, b_fused)
    return y_seq[0], h_seq[0]


def _init_linear(key, out_features, in_features):
    """Deterministic init mimicking nn.Linear default (uniform +-1/sqrt(fan_in))."""
    kw, kb = jax.random.split(key)
    bound = 1.0 / jnp.sqrt(jnp.float32(in_features))
    w = jax.random.uniform(kw, (out_features, in_features), jnp.float32,
                           minval=-bound, maxval=bound)
    b = jax.random.uniform(kb, (out_features,), jnp.float32,
                           minval=-bound, maxval=bound)
    return w, b


if __name__ == "__main__":
    batch_size, input_size, hidden_size, output_size = 4, 16, 32, 8
    seq_len = 8

    key = jax.random.PRNGKey(0)
    kx, kh, k1, k2 = jax.random.split(key, 4)

    x_seq = jax.random.normal(kx, (seq_len, batch_size, input_size), jnp.float32)
    h0 = jax.random.normal(kh, (batch_size, hidden_size), jnp.float32)

    w_i2h, b_i2h = _init_linear(k1, hidden_size, input_size + hidden_size)
    w_i2o, b_i2o = _init_linear(k2, output_size, input_size + hidden_size)

    # One-time parameter preparation (transpose + branch fusion).
    w_fused, b_fused = prepare_params(w_i2h, b_i2h, w_i2o, b_i2o)

    step_fn = jax.jit(basic_rnn_forward)
    seq_fn = jax.jit(basic_rnn_sequence)

    # ---- Single-step check (matches BasicRNN.forward exactly). ----
    x0 = x_seq[0]
    y0, h1 = step_fn(x0, h0, w_fused, b_fused)
    jax.block_until_ready((y0, h1))

    combined = jnp.concatenate([x0, h0], axis=1)
    h1_ref = combined @ w_i2h.T + b_i2h
    y0_ref = jax.nn.log_softmax(combined @ w_i2o.T + b_i2o, axis=1)
    assert jnp.allclose(y0, y0_ref, atol=1e-4), "single-step y mismatch"
    assert jnp.allclose(h1, h1_ref, atol=1e-4), "single-step h mismatch"

    # ---- Fused-sequence check against a pure-JAX scan reference. ----
    y_seq, h_seq = seq_fn(x_seq, h0, w_fused, b_fused)
    jax.block_until_ready((y_seq, h_seq))

    def scan_step(h, x_t):
        c = jnp.concatenate([x_t, h], axis=1)
        h_new = c @ w_i2h.T + b_i2h
        y_t = jax.nn.log_softmax(c @ w_i2o.T + b_i2o, axis=1)
        return h_new, (y_t, h_new)

    _, (y_seq_ref, h_seq_ref) = jax.lax.scan(scan_step, h0, x_seq)
    assert jnp.allclose(y_seq, y_seq_ref, atol=1e-4), "sequence y mismatch"
    assert jnp.allclose(h_seq, h_seq_ref, atol=1e-4), "sequence h mismatch"

    print("KERNEL_OK")
</pallas_src>

<mosaic_0001>
module attributes {stable_mosaic.version = 11 : i64} {
  func.func @_rnn_seq_kernel(%arg0: i32, %arg1: memref<8x32xf32, #tpu.memory_space<vmem>>, %arg2: memref<1x8x16xf32, #tpu.memory_space<vmem>>, %arg3: memref<48x40xf32, #tpu.memory_space<vmem>>, %arg4: memref<1x40xf32, #tpu.memory_space<vmem>>, %arg5: memref<1x8x40xf32, #tpu.memory_space<vmem>>, %arg6: memref<8x32xf32, #tpu.memory_space<vmem>>) attributes {dimension_semantics = [#tpu.dimension_semantics<arbitrary>], iteration_bounds = array<i64: 1>, scalar_prefetch = 0 : i64, scratch_operands = 1 : i64, tpu.core_type = #tpu.core_type<tc>, window_params = [{pipeline_mode = #tpu.pipeline_mode<synchronous>, transform_indices = @transform_0, window_bounds = array<i64: 8, 32>}, {transform_indices = @transform_1, window_bounds = array<i64: 1, 8, 16>}, {pipeline_mode = #tpu.pipeline_mode<synchronous>, transform_indices = @transform_2, window_bounds = array<i64: 48, 40>}, {pipeline_mode = #tpu.pipeline_mode<synchronous>, transform_indices = @transform_3, window_bounds = array<i64: 1, 40>}, {transform_indices = @transform_4, window_bounds = array<i64: 1, 8, 40>}]} {
    %c0_i32 = arith.constant 0 : i32
    %0 = arith.cmpi eq, %arg0, %c0_i32 : i32
    %1 = arith.extui %0 : i1 to i32
    %c0_i32_0 = arith.constant 0 : i32
    %2 = arith.cmpi ne, %1, %c0_i32_0 : i32
    scf.if %2 {
      %c0_20 = arith.constant 0 : index
      %c0_21 = arith.constant 0 : index
      %33 = vector.load %arg1[%c0_20, %c0_21] : memref<8x32xf32, #tpu.memory_space<vmem>>, vector<8x32xf32>
      %c0_22 = arith.constant 0 : index
      %c0_23 = arith.constant 0 : index
      %34 = vector.load %arg6[%c0_22, %c0_23] : memref<8x32xf32, #tpu.memory_space<vmem>>, vector<8x32xf32>
      tpu.vector_store %arg6[%c0_22, %c0_23], %33 {strides = array<i32>} : memref<8x32xf32, #tpu.memory_space<vmem>>, vector<8x32xf32>,
    } else {
    }
    %c0 = arith.constant 0 : index
    %c0_1 = arith.constant 0 : index
    %c0_2 = arith.constant 0 : index
    %3 = vector.load %arg2[%c0, %c0_1, %c0_2] : memref<1x8x16xf32, #tpu.memory_space<vmem>>, vector<1x8x16xf32>
    %4 = vector.shape_cast %3 : vector<1x8x16xf32> to vector<8x16xf32>
    %c0_3 = arith.constant 0 : index
    %c0_4 = arith.constant 0 : index
    %5 = vector.load %arg6[%c0_3, %c0_4] : memref<8x32xf32, #tpu.memory_space<vmem>>, vector<8x32xf32>
    %c0_5 = arith.constant 0 : index
    %c0_6 = arith.constant 0 : index
    %6 = vector.load %arg3[%c0_5, %c0_6] : memref<48x40xf32, #tpu.memory_space<vmem>>, vector<16x40xf32>
    %cst = arith.constant dense<0.000000e+00> : vector<8x40xf32>
    %7 = tpu.matmul %4, %6, %cst {dimension_numbers = #tpu.dot_dimension_numbers<[1], [0], [0], [1], [0, 0, 1, 1], [], []>} : vector<8x16xf32>, vector<16x40xf32>, vector<8x40xf32> -> vector<8x40xf32>
    %c16 = arith.constant 16 : index
    %c0_7 = arith.constant 0 : index
    %8 = vector.load %arg3[%c16, %c0_7] : memref<48x40xf32, #tpu.memory_space<vmem>>, vector<32x40xf32>
    %cst_8 = arith.constant dense<0.000000e+00> : vector<8x40xf32>
    %9 = tpu.matmul %5, %8, %cst_8 {dimension_numbers = #tpu.dot_dimension_numbers<[1], [0], [0], [1], [0, 0, 1, 1], [], []>} : vector<8x32xf32>, vector<32x40xf32>, vector<8x40xf32> -> vector<8x40xf32>
    %10 = arith.addf %7, %9 : vector<8x40xf32>
    %c0_9 = arith.constant 0 : index
    %c0_10 = arith.constant 0 : index
    %11 = vector.load %arg4[%c0_9, %c0_10] : memref<1x40xf32, #tpu.memory_space<vmem>>, vector<1x40xf32>
    %12 = vector.broadcast %11 : vector<1x40xf32> to vector<8x40xf32>
    %13 = arith.addf %10, %12 : vector<8x40xf32>
    %14 = vector.extract_strided_slice %13 {offsets = [0, 0], sizes = [8, 32], strides = [1, 1]} : vector<8x40xf32> to vector<8x32xf32>
    %15 = vector.extract_strided_slice %13 {offsets = [0, 32], sizes = [8, 8], strides = [1, 1]} : vector<8x40xf32> to vector<8x8xf32>
    %cst_11 = arith.constant dense<0xFF800000> : vector<8xf32>
    %16 = vector.multi_reduction <maximumf>, %15, %cst_11 [1] : vector<8x8xf32> to vector<8xf32>
    %17 = vector.shape_cast %16 : vector<8xf32> to vector<8x1xf32>
    %18 = vector.broadcast %17 : vector<8x1xf32> to vector<8x8xf32>
    %19 = arith.subf %15, %18 : vector<8x8xf32>
    %20 = math.exp %19 : vector<8x8xf32>
    %cst_12 = arith.constant dense<0.000000e+00> : vector<8xf32>
    %21 = vector.multi_reduction <add>, %20, %cst_12 [1] : vector<8x8xf32> to vector<8xf32>
    %22 = vector.shape_cast %21 : vector<8xf32> to vector<8x1xf32>
    %23 = math.log %22 : vector<8x1xf32>
    %24 = vector.broadcast %23 : vector<8x1xf32> to vector<8x8xf32>
    %25 = arith.subf %19, %24 : vector<8x8xf32>
    %c0_13 = arith.constant 0 : index
    %c0_14 = arith.constant 0 : index
    %26 = vector.load %arg6[%c0_13, %c0_14] : memref<8x32xf32, #tpu.memory_space<vmem>>, vector<8x32xf32>
    tpu.vector_store %arg6[%c0_13, %c0_14], %14 {strides = array<i32>} : memref<8x32xf32, #tpu.memory_space<vmem>>, vector<8x32xf32>,
    %c0_15 = arith.constant 0 : index
    %c0_16 = arith.constant 0 : index
    %c0_17 = arith.constant 0 : index
    %27 = vector.load %arg5[%c0_15, %c0_16, %c0_17] : memref<1x8x40xf32, #tpu.memory_space<vmem>>, vector<1x8x32xf32>
    %28 = vector.shape_cast %27 : vector<1x8x32xf32> to vector<8x32xf32>
    %29 = vector.shape_cast %14 : vector<8x32xf32> to vector<1x8x32xf32>
    tpu.vector_store %arg5[%c0_15, %c0_16, %c0_17], %29 {strides = array<i32>} : memref<1x8x40xf32, #tpu.memory_space<vmem>>, vector<1x8x32xf32>,
    %c0_18 = arith.constant 0 : index
    %c0_19 = arith.constant 0 : index
    %c32 = arith.constant 32 : index
    %30 = vector.load %arg5[%c0_18, %c0_19, %c32] : memref<1x8x40xf32, #tpu.memory_space<vmem>>, vector<1x8x8xf32>
    %31 = vector.shape_cast %30 : vector<1x8x8xf32> to vector<8x8xf32>
    %32 = vector.shape_cast %25 : vector<8x8xf32> to vector<1x8x8xf32>
    tpu.vector_store %arg5[%c0_18, %c0_19, %c32], %32 {strides = array<i32>} : memref<1x8x40xf32, #tpu.memory_space<vmem>>, vector<1x8x8xf32>,
    return
  }
  func.func @transform_0(%arg0: i32) -> (i32, i32) {
    %c0_i32 = arith.constant 0 : i32
    %c0_i32_0 = arith.constant 0 : i32
    %c0_i32_1 = arith.constant 0 : i32
    return %c0_i32, %c0_i32_0 : i32, i32
  }
  func.func @transform_1(%arg0: i32) -> (i32, i32, i32) {
    %c0_i32 = arith.constant 0 : i32
    %c0_i32_0 = arith.constant 0 : i32
    %c0_i32_1 = arith.constant 0 : i32
    return %arg0, %c0_i32, %c0_i32_0 : i32, i32, i32
  }
  func.func @transform_2(%arg0: i32) -> (i32, i32) {
    %c0_i32 = arith.constant 0 : i32
    %c0_i32_0 = arith.constant 0 : i32
    %c0_i32_1 = arith.constant 0 : i32
    return %c0_i32, %c0_i32_0 : i32, i32
  }
  func.func @transform_3(%arg0: i32) -> (i32, i32) {
    %c0_i32 = arith.constant 0 : i32
    %c0_i32_0 = arith.constant 0 : i32
    %c0_i32_1 = arith.constant 0 : i32
    return %c0_i32, %c0_i32_0 : i32, i32
  }
  func.func @transform_4(%arg0: i32) -> (i32, i32, i32) {
    %c0_i32 = arith.constant 0 : i32
    %c0_i32_0 = arith.constant 0 : i32
    %c0_i32_1 = arith.constant 0 : i32
    return %arg0, %c0_i32, %c0_i32_0 : i32, i32, i32
  }
}

</mosaic_0001>

<bundles_post_ra>
// kernel: basic_rnn_forward.1
= control target key start
LH: loop header
LB: loop body
LE: loop exit
PB: predicated region body
PF: predicated region fallthrough
CT: control target
= control target key end

     0   :  { %v259_v0 = vmov 0.0|0.0   ;;  %vm22_vm0 = vcmask 261120   ;;  %vm260_vm1 = vmmov 0   ;;  %v261_v8 = vmov 0.0   ;;  %s327_s2 = inlined_call_operand.vmem [shape: f32[48,40], index: 2, kind: input, shape index: {}]   ;;  %s328_s0 = inlined_call_operand.vmem [shape: f32[8,32], index: 0, kind: input, shape index: {}]   ;;  %s329_s1 = inlined_call_operand.vmem [shape: f32[1,8,16], index: 1, kind: input, shape index: {}]   ;;  %s330_s3 = inlined_call_operand.vmem [shape: f32[1,40], index: 3, kind: input, shape index: {}]   ;;  %s331_s4 = inlined_call_operand.vmem [shape: f32[1,8,40], index: 4, kind: output, shape index: {}]  }
   0x1   :  { %242 = vmatprep.subr.bf16.mxu0 %v259_v0  ;;  %v28_v1 = vld [vmem:[%s327_s2 + $0x10] sm:$0xff]  ;;  %v29_v2 = vld [vmem:[%s327_s2 + $0x18] sm:$0xff]  ;;  %248 = vmatprep.subr.bf16.mxu1 %v259_v0  ;;  %v26_v3 = vld [vmem:[%s327_s2] sm:$0xff]  ;;  %vm106_vm2 = vcmask 130048   ;;  %vm188_vm3 = vcmask 326912   ;;  %vm199_vm4 = vcmask 64512  }
   0x2   :  { %v243_v4 = vpack.c.bf16 %v29_v2, %v28_v1  ;;  %v27_v5 = vld [vmem:[%s327_s2 + $0x8] sm:$0xff]  ;;  %v30_v6 = vld [vmem:[%s327_s2 + $0x20] sm:$0xff]  ;;  %239 = vmatprep.mubr.msk.f32.mxu1 %vm260_vm1, %v261_v8  ;;  %232 = vmatprep.mubr.msk.f32.mxu0 %vm260_vm1, %v261_v8 }
   0x3   :  { %v31_v7 = vld [vmem:[%s327_s2 + $0x28] sm:$0xff]  ;;  %v249_v9 = vpack.c.bf16 %v27_v5, %v26_v3  ;;  %v21_v10 = vld [vmem:[%s328_s0] sm:$0xff] }
   0x4   :  { %244 = vmatpush3.bf16.msra.mxu0 %v243_v4  ;;  %v246_v11 = vpack.c.bf16 %v31_v7, %v30_v6  ;;  %23 = vst.msk [vmem:[#allocation2] sm:$0xff] %vm22_vm0, %v21_v10  ;;  %v24_v12 = vld [vmem:[%s329_s1] sm:$0xff] }
   0x5   :  { %245 = vmatprep.subr.bf16.mxu0 %v259_v0  ;;  %250 = vmatpush3.bf16.msra.mxu1 %v249_v9  ;;  %v215_v17 = vld [vmem:[%s330_s3] ss:$0 sm:$0xff]  ;;  %s262_s3 = smov 96  }
   0x8   :  { %247 = vmatpush3.bf16.msra.mxu0 %v246_v11  ;;  %240 = vmatmul.mubr.msk.f32.vlgmr.msra.gmra.mrb[0].mxu1 %vm106_vm2, %v24_v12 }
   0xb   :  { %v25_v13 = vld [vmem:[#allocation2] sm:$0xff] }
   0xc   :  { %233 = vmatmul.mubr.msk.f32.vlgmr.msra.gmra.mrb[0].mxu0 %vm22_vm0, %v25_v13 }
  0xdb   :  { %v176_v14 = vpop.f32.mrb[0].mxu1 }
  0xdc   :  { %v241_v15 = vpop.f32.mrb[1].mxu1 }
  0xdf   :  { %v102_v16 = vpop.f32.mrb[0].mxu0 }
  0xe0   :  { %v177_v18 = vadd.f32 %v176_v14, %v102_v16  ;;  %v234_v19 = vpop.f32.mrb[1].mxu0 }
  0xe2   :  { %v187_v20 = vadd.f32 %v215_v17, %v177_v18 }
  0xe4   :  { %206 = vst.msk [vmem:[#allocation2] sm:$0xff] %vm22_vm0, %v187_v20  ;;  %207 = vst.msk [vmem:[%s331_s4] sm:$0xff] %vm22_vm0, %v187_v20  ;;  %v189_v21 = vsel %vm188_vm3, %v187_v20, -inf }
  0xe5   :  { %190 = vmax.xlane.f32.xlu0 %v189_v21 }
 0x172   :  { %v191_v22 = vpop.xlane.xlu0 %190 }
 0x173   :  { %v192_v23 = vsub.f32 %v187_v20, %v191_v22 }
 0x175   :  { %v193_v24 = vmul.f32 1.442695, %v192_v23 }
 0x177   :  { %255 = vpow2.f32 %v193_v24 }
 0x181   :  { %v256_v25 = vpop.eup %255 }
 0x182   :  { %196 = vrot.lane.b32.xlu0 %v256_v25, %s262_s3 }
 0x1f4   :  { %v197_v26 = vpop.permute.xlu0 %196 }
 0x1f5   :  { %v200_v27 = vsel %vm199_vm4, %v197_v26, 0.0 }
 0x1f6   :  { %201 = vadd.xlane.f32.xlu1 %v200_v27 }
 0x283   :  { %v202_v28 = vpop.xlane.xlu1 %201 }
 0x284   :  { %257 = vlog2.f32 %v202_v28 }
 0x28e   :  { %v258_v29 = vpop.eup %257 }
 0x28f   :  { %v204_v30 = vmul.f32 0.6931472, %v258_v29 }
 0x291   :  { %v205_v31 = vsub.f32 %v192_v23, %v204_v30 }
 0x293   :  { %208 = vst.msk [vmem:[%s331_s4] sm:$0xff] %vm188_vm3, %v205_v31 }

</bundles_post_ra>
